<compile_context>
chip_gen: v5e
topology: v5e:2x2
jax: 0.10.0
libtpu: 0.0.40
codegen_flags: <defaults>
</compile_context>

<pallas_src>
import functools
import math

import jax
import jax.numpy as jnp
import numpy as np
from jax.experimental import pallas as pl
from jax.experimental.pallas import tpu as pltpu


def _round_up(x, m):
    return -(-x // m) * m


def _rbf_kernel(d_ref, p_ref, o_ref, *, inv_cutoff, k, pack):
    """One tile of the RBF layer.

    d_ref: (TM2, pack)     distances, `pack` per packed output row
    p_ref: (3, pack*k)     per-lane constants [a; b; g], a=-w, b=2wc, g=-wc^2
                           (each tiled `pack` times along lanes)
    o_ref: (TM2, pack*k)   packed output; bit-identical to (TM2*pack, k)
    """
    d_in = d_ref[...].astype(jnp.float32)                # (TM2, pack)
    tm2 = d_in.shape[0]
    lanes = pack * k

    # Broadcast each packed distance across its k output lanes:
    #   lanes [j*k, (j+1)*k) <- d_in[:, j]
    if pack == 1:
        d = d_in                                         # (TM2, 1), broadcasts below
    else:
        lane = jax.lax.broadcasted_iota(jnp.int32, (tm2, lanes), 1)
        d = d_in[:, 0:1]
        for j in range(1, pack):
            d = jnp.where(lane >= j * k, d_in[:, j:j + 1], d)   # (TM2, lanes)

    # cutoff_fn: where(x < 1, 1 - 6x^5 + 15x^4 - 10x^3, 0), Horner form.
    x = d * inv_cutoff
    x3 = x * x * x
    poly = ((-6.0 * x + 15.0) * x - 10.0) * x3 + 1.0
    cut = jnp.where(x < 1.0, poly, 0.0)

    # exp(-w * (exp(-d) - c)^2) == exp((a*e + b)*e + g), e = exp(-d)
    e = jnp.exp(-d)
    a = p_ref[0:1, :]
    b = p_ref[1:2, :]
    g = p_ref[2:3, :]
    gauss = jnp.exp((a * e + b) * e + g)

    o_ref[...] = (cut * gauss).astype(o_ref.dtype)


@functools.partial(jax.jit, static_argnames=("cutoff", "block_m", "out_dtype"))
def rbf_layer(D, centers, widths, *, cutoff=10.0, block_m=4096, out_dtype=None):
    """D: arbitrary-shaped distances. Returns D.shape + (K,)."""
    orig_shape = D.shape
    K = int(centers.shape[-1])
    out_dtype = D.dtype if out_dtype is None else out_dtype

    # Lane-dense packing: (M, K) row-major == (M/pack, pack*K) when pack*K = 128.
    pack = 128 // K if (K < 128 and 128 % K == 0) else 1
    lanes = pack * K

    m = math.prod(orig_shape) if orig_shape else 1
    m_pad = _round_up(m, pack)                   # static; == m unless m % pack != 0
    d_flat = D.reshape(-1)
    if m_pad != m:                               # rare fallback path
        d_flat = jnp.pad(d_flat, (0, m_pad - m))
    m2 = m_pad // pack
    d2 = d_flat.reshape(m2, pack)

    # Per-lane f32 constants, folded in the wrapper (not per-tile in the kernel).
    c = centers.reshape(-1).astype(jnp.float32)
    w = widths.reshape(-1).astype(jnp.float32)
    params = jnp.stack([jnp.tile(-w, pack),
                        jnp.tile(2.0 * w * c, pack),
                        jnp.tile(-(w * c * c), pack)])            # (3, lanes)

    # Packed rows per tile. block_m distances per step; round to the (16,128)
    # layout multiple and don't exceed the (rounded) array so tiny inputs don't
    # compute on a huge mostly-invalid block.
    tm2 = min(_round_up(max(block_m // pack, 8), 16), _round_up(m2, 16))
    num_tiles = pl.cdiv(m2, tm2)                 # ragged last tile masked by Pallas
    # Per-step VMEM (double buffered): ~2*(tm2*512B for D-tile lane padding
    # + tm2*lanes*itemsize for out) ~= 4 MiB at the defaults -> fits v5e/v6e/v7x.

    kernel = functools.partial(_rbf_kernel, inv_cutoff=1.0 / float(cutoff),
                               k=K, pack=pack)

    in_item = jnp.dtype(D.dtype).itemsize
    out_item = jnp.dtype(out_dtype).itemsize
    cost = pl.CostEstimate(
        flops=20 * m_pad * K,                    # poly + gaussian elementwise work
        transcendentals=2 * m_pad * K,           # exp(-D) broadcast + gaussian exp
        bytes_accessed=m_pad * in_item + m_pad * K * out_item + 3 * lanes * 4,
    )

    out = pl.pallas_call(
        kernel,
        out_shape=jax.ShapeDtypeStruct((m2, lanes), out_dtype),
        grid=(num_tiles,),
        in_specs=[
            pl.BlockSpec((tm2, pack), lambda i: (i, 0)),    # streamed D tile
            pl.BlockSpec((3, lanes), lambda i: (0, 0)),     # resident constants
        ],
        out_specs=pl.BlockSpec((tm2, lanes), lambda i: (i, 0)),
        compiler_params=pltpu.CompilerParams(
            dimension_semantics=("parallel",)),
        cost_estimate=cost,
    )(d2, params)

    out = out.reshape(m_pad, K)                  # free: same bytes, row-major
    if m_pad != m:
        out = out[:m]                            # only when m % pack != 0
    return out.reshape(*orig_shape, K)


# ---- parameter construction matching the PyTorch module's __init__ ----------

def _softplus_inverse(x):
    return x + np.log(-np.expm1(-x))


def _softplus(x):
    return np.log1p(np.exp(x))


def init_rbf_params(K=64, cutoff=10.0, dtype=jnp.float32):
    centers = _softplus(_softplus_inverse(np.linspace(1.0, np.exp(-cutoff), K)))
    widths = _softplus(
        np.full(K, _softplus_inverse(0.5 / (1.0 - np.exp(-cutoff) / K) ** 2)))
    return jnp.asarray(centers, dtype), jnp.asarray(widths, dtype)


if __name__ == "__main__":
    K, cutoff = 64, 10.0
    batch, n = 2, 16

    key = jax.random.PRNGKey(0)
    # distances in [0, 12): some exceed the cutoff so the `where` branch is hit
    D = jax.random.uniform(key, (batch, n, n), jnp.float32,
                           minval=0.0, maxval=12.0)
    centers, widths = init_rbf_params(K, cutoff)

    def ref(Dv):
        d = Dv[..., None]
        x = d / cutoff
        cut = jnp.where(x < 1, 1 - 6 * x ** 5 + 15 * x ** 4 - 10 * x ** 3,
                        jnp.zeros_like(x))
        return cut * jnp.exp(-widths * (jnp.exp(-d) - centers) ** 2)

    y = rbf_layer(D, centers, widths, cutoff=cutoff)
    jax.block_until_ready(y)
    assert y.shape == (batch, n, n, K), y.shape
    np.testing.assert_allclose(np.asarray(y), np.asarray(ref(D)),
                               atol=5e-5, rtol=5e-5)

    # odd element count -> exercises the rare pad + slice fallback path
    D2 = jax.random.uniform(jax.random.PRNGKey(1), (3, 5, 5), jnp.float32,
                            minval=0.0, maxval=12.0)
    y2 = rbf_layer(D2, centers, widths, cutoff=cutoff)
    jax.block_until_ready(y2)
    assert y2.shape == (3, 5, 5, K), y2.shape
    np.testing.assert_allclose(np.asarray(y2), np.asarray(ref(D2)),
                               atol=5e-5, rtol=5e-5)

    print("KERNEL_OK")
</pallas_src>

<mosaic_0001>
module attributes {stable_mosaic.version = 11 : i64} {
  func.func @_rbf_kernel(%arg0: i32, %arg1: memref<256x2xf32, #tpu.memory_space<vmem>>, %arg2: memref<3x128xf32, #tpu.memory_space<vmem>>, %arg3: memref<256x128xf32, #tpu.memory_space<vmem>>) attributes {dimension_semantics = [#tpu.dimension_semantics<parallel>], iteration_bounds = array<i64: 1>, scalar_prefetch = 0 : i64, scratch_operands = 0 : i64, tpu.core_type = #tpu.core_type<tc>, window_params = [{transform_indices = @transform_0, window_bounds = array<i64: 256, 2>}, {pipeline_mode = #tpu.pipeline_mode<synchronous>, transform_indices = @transform_1, window_bounds = array<i64: 3, 128>}, {transform_indices = @transform_2, window_bounds = array<i64: 256, 128>}]} {
    %c0 = arith.constant 0 : index
    %c0_0 = arith.constant 0 : index
    %0 = vector.load %arg1[%c0, %c0_0] : memref<256x2xf32, #tpu.memory_space<vmem>>, vector<256x2xf32>
    %1 = tpu.iota {dimensions = array<i32: 1>} : vector<256x128xi32>
    %2 = vector.extract_strided_slice %0 {offsets = [0, 0], sizes = [256, 1], strides = [1, 1]} : vector<256x2xf32> to vector<256x1xf32>
    %c64_i32 = arith.constant 64 : i32
    %3 = vector.broadcast %c64_i32 : i32 to vector<256x128xi32>
    %4 = arith.cmpi sge, %1, %3 : vector<256x128xi32>
    %5 = vector.extract_strided_slice %0 {offsets = [0, 1], sizes = [256, 1], strides = [1, 1]} : vector<256x2xf32> to vector<256x1xf32>
    %6 = vector.shape_cast %5 : vector<256x1xf32> to vector<256x1xf32>
    %7 = vector.broadcast %6 : vector<256x1xf32> to vector<256x128xf32>
    %8 = vector.shape_cast %2 : vector<256x1xf32> to vector<256x1xf32>
    %9 = vector.broadcast %8 : vector<256x1xf32> to vector<256x128xf32>
    %10 = arith.select %4, %7, %9 : vector<256x128xi1>, vector<256x128xf32>
    %cst = arith.constant 1.000000e-01 : f32
    %11 = vector.broadcast %cst : f32 to vector<256x128xf32>
    %12 = arith.mulf %10, %11 : vector<256x128xf32>
    %13 = arith.mulf %12, %12 : vector<256x128xf32>
    %14 = arith.mulf %13, %12 : vector<256x128xf32>
    %cst_1 = arith.constant -6.000000e+00 : f32
    %15 = vector.broadcast %cst_1 : f32 to vector<256x128xf32>
    %16 = arith.mulf %15, %12 : vector<256x128xf32>
    %cst_2 = arith.constant 1.500000e+01 : f32
    %17 = vector.broadcast %cst_2 : f32 to vector<256x128xf32>
    %18 = arith.addf %16, %17 : vector<256x128xf32>
    %19 = arith.mulf %18, %12 : vector<256x128xf32>
    %cst_3 = arith.constant 1.000000e+01 : f32
    %20 = vector.broadcast %cst_3 : f32 to vector<256x128xf32>
    %21 = arith.subf %19, %20 : vector<256x128xf32>
    %22 = arith.mulf %21, %14 : vector<256x128xf32>
    %cst_4 = arith.constant 1.000000e+00 : f32
    %23 = vector.broadcast %cst_4 : f32 to vector<256x128xf32>
    %24 = arith.addf %22, %23 : vector<256x128xf32>
    %cst_5 = arith.constant 1.000000e+00 : f32
    %25 = vector.broadcast %cst_5 : f32 to vector<256x128xf32>
    %26 = arith.cmpf olt, %12, %25 : vector<256x128xf32>
    %cst_6 = arith.constant 0.000000e+00 : f32
    %27 = vector.broadcast %cst_6 : f32 to vector<256x128xf32>
    %28 = arith.select %26, %24, %27 : vector<256x128xi1>, vector<256x128xf32>
    %cst_7 = arith.constant 0.000000e+00 : f32
    %29 = vector.broadcast %cst_7 : f32 to vector<256x128xf32>
    %30 = arith.subf %29, %10 : vector<256x128xf32>
    %31 = math.exp %30 : vector<256x128xf32>
    %c0_8 = arith.constant 0 : index
    %c0_9 = arith.constant 0 : index
    %32 = vector.load %arg2[%c0_8, %c0_9] : memref<3x128xf32, #tpu.memory_space<vmem>>, vector<1x128xf32>
    %c1 = arith.constant 1 : index
    %c0_10 = arith.constant 0 : index
    %33 = vector.load %arg2[%c1, %c0_10] : memref<3x128xf32, #tpu.memory_space<vmem>>, vector<1x128xf32>
    %c2 = arith.constant 2 : index
    %c0_11 = arith.constant 0 : index
    %34 = vector.load %arg2[%c2, %c0_11] : memref<3x128xf32, #tpu.memory_space<vmem>>, vector<1x128xf32>
    %35 = vector.broadcast %32 : vector<1x128xf32> to vector<256x128xf32>
    %36 = arith.mulf %35, %31 : vector<256x128xf32>
    %37 = vector.broadcast %33 : vector<1x128xf32> to vector<256x128xf32>
    %38 = arith.addf %36, %37 : vector<256x128xf32>
    %39 = arith.mulf %38, %31 : vector<256x128xf32>
    %40 = vector.broadcast %34 : vector<1x128xf32> to vector<256x128xf32>
    %41 = arith.addf %39, %40 : vector<256x128xf32>
    %42 = math.exp %41 : vector<256x128xf32>
    %43 = arith.mulf %28, %42 : vector<256x128xf32>
    %c0_12 = arith.constant 0 : index
    %c0_13 = arith.constant 0 : index
    %44 = vector.load %arg3[%c0_12, %c0_13] : memref<256x128xf32, #tpu.memory_space<vmem>>, vector<256x128xf32>
    tpu.vector_store %arg3[%c0_12, %c0_13], %43 {strides = array<i32>} : memref<256x128xf32, #tpu.memory_space<vmem>>, vector<256x128xf32>,
    return
  }
  func.func @transform_0(%arg0: i32) -> (i32, i32) {
    %c0_i32 = arith.constant 0 : i32
    %c0_i32_0 = arith.constant 0 : i32
    return %arg0, %c0_i32 : i32, i32
  }
  func.func @transform_1(%arg0: i32) -> (i32, i32) {
    %c0_i32 = arith.constant 0 : i32
    %c0_i32_0 = arith.constant 0 : i32
    %c0_i32_1 = arith.constant 0 : i32
    return %c0_i32, %c0_i32_0 : i32, i32
  }
  func.func @transform_2(%arg0: i32) -> (i32, i32) {
    %c0_i32 = arith.constant 0 : i32
    %c0_i32_0 = arith.constant 0 : i32
    return %arg0, %c0_i32 : i32, i32
  }
}

</mosaic_0001>

<bundles_post_ra>
// kernel: tile.28
= control target key start
LH: loop header
LB: loop body
LE: loop exit
PB: predicated region body
PF: predicated region fallthrough
CT: control target
= control target key end

     0   :  { %vm7_vm0 = vcmask 523264   ;;  %vm13_vm1 = vcmask 1048064   ;;  %s39_s0 = inlined_call_operand.vmem [shape: f32[2,64], index: 0, kind: input, shape index: {}]   ;;  %s40_s1 = inlined_call_operand.vmem [shape: f32[1,128], index: 1, kind: output, shape index: {}]  }
   0x1   :  { %v4_v0 = vld [vmem:[%s39_s0] sm:$0x3]  ;;  %s22_s0 = smov 64  }
   0x2   :  { %5 = vst [vmem:[#allocation1] sm:$0x3] %v4_v0 }
   0x9   :  { %v10_v1 = vld [vmem:[#allocation1 + $0x1] sm:$0x1]   ;;  %v6_v2 = vld [vmem:[#allocation1] sm:$0x1]  }
   0xa   :  { %11 = vrot.lane.b32.xlu0 %v10_v1, %s22_s0  ;;  %8 = vst.msk [vmem:[#allocation0] sm:$0x1] %vm7_vm0, %v6_v2  }
  0x7c   :  { %v12_v3 = vpop.permute.xlu0 %11  }
  0x7d   :  { %14 = vst.msk [vmem:[#allocation0] sm:$0x1] %vm13_vm1, %v12_v3  }
  0x84   :  { %v17_v4 = vld [vmem:[#allocation0] sm:$0x1] }
  0x85   :  { %20 = vst [vmem:[%s40_s1] sm:$0x1] %v17_v4 }

// kernel: tile.22
= control target key start
LH: loop header
LB: loop body
LE: loop exit
PB: predicated region body
PF: predicated region fallthrough
CT: control target
= control target key end

     0   :  { %s22_s0 = inlined_call_operand.vmem [shape: f32[64], index: 0, kind: input, shape index: {}]   ;;  %s23_s1 = inlined_call_operand.vmem [shape: f32[2,64], index: 1, kind: output, shape index: {}]  }
   0x1   :  { %v4_v0 = vld [vmem:[%s22_s0] ss:$0 sm:$0xff] }
   0x2   :  { %5 = vst [vmem:[%s23_s1] sm:$0x3] %v4_v0 }

// kernel: rbf_layer.1
= control target key start
LH: loop header
LB: loop body
LE: loop exit
PB: predicated region body
PF: predicated region fallthrough
CT: control target
= control target key end

     0   :  { %v1254_v0 = vmov 1   ;;  %v1255_v33 = vmov 0   ;;  %v43_v56 = vlaneseq  ;;  %s2088_s0 = inlined_call_operand.vmem [shape: f32[256,2], index: 0, kind: input, shape index: {}]   ;;  %s2089_s1 = inlined_call_operand.vmem [shape: f32[3,128], index: 1, kind: input, shape index: {}]   ;;  %s2090_s2 = inlined_call_operand.vmem [shape: f32[256,128], index: 2, kind: output, shape index: {}]  }
   0x1   :  { %1116 = vset.pattern.permute.xlu2 %v1254_v0  ;;  %1115 = vset.pattern.permute.xlu1 %v1254_v0  ;;  %v1274_v1 = vld [vmem:[%s2088_s0 + $0x20] sm:$0xff]  ;;  %v1279_v2 = vld [vmem:[%s2088_s0 + $0x10] sm:$0xff]  ;;  %v1292_v4 = vld [vmem:[%s2088_s0 + $0x28] sm:$0xff] }
   0x2   :  { %v1284_v3 = vld [vmem:[%s2088_s0] sm:$0xff]  ;;  %1114 = vset.pattern.permute.xlu0 %v1254_v0  ;;  %68 = vperm.xlu2 %1116, %v1274_v1   ;;  %v1297_v5 = vld [vmem:[%s2088_s0 + $0x18] sm:$0xff]  ;;  %v1302_v6 = vld [vmem:[%s2088_s0 + $0x8] sm:$0xff]  ;;  %v1474_v59 = vand.u32 127, %v43_v56 }
   0x3   :  { %58 = vperm.xlu1 %1115, %v1279_v2   ;;  %48 = vperm.xlu0 %1114, %v1284_v3   ;;  %v1310_v7 = vld [vmem:[%s2088_s0 + $0x40] sm:$0xff]  ;;  %v1315_v8 = vld [vmem:[%s2088_s0 + $0x38] sm:$0xff]  ;;  %v17_v9 = vld [vmem:[%s2088_s0 + $0x30] sm:$0xff] }
   0x4   :  { %v1325_v10 = vld [vmem:[%s2088_s0 + $0x58] sm:$0xff]  ;;  %v21_v11 = vld [vmem:[%s2088_s0 + $0x50] sm:$0xff]  ;;  %v20_v12 = vld [vmem:[%s2088_s0 + $0x48] sm:$0xff]  ;;  %vm45_vm0 = vcmp.ge.s32.totalorder %v1474_v59, 64 }
   0x5   :  { %v1337_v13 = vld [vmem:[%s2088_s0 + $0x70] sm:$0xff]  ;;  %v24_v14 = vld [vmem:[%s2088_s0 + $0x68] sm:$0xff]  ;;  %v23_v15 = vld [vmem:[%s2088_s0 + $0x60] sm:$0xff] }
   0x6   :  { %v1349_v16 = vld [vmem:[%s2088_s0 + $0x88] sm:$0xff]  ;;  %v27_v17 = vld [vmem:[%s2088_s0 + $0x80] sm:$0xff]  ;;  %v26_v18 = vld [vmem:[%s2088_s0 + $0x78] sm:$0xff] }
   0x7   :  { %v1361_v19 = vld [vmem:[%s2088_s0 + $0xa0] sm:$0xff]  ;;  %v30_v20 = vld [vmem:[%s2088_s0 + $0x98] sm:$0xff]  ;;  %v29_v21 = vld [vmem:[%s2088_s0 + $0x90] sm:$0xff] }
   0x8   :  { %v1373_v22 = vld [vmem:[%s2088_s0 + $0xb8] sm:$0xff]  ;;  %v33_v23 = vld [vmem:[%s2088_s0 + $0xb0] sm:$0xff]  ;;  %v32_v24 = vld [vmem:[%s2088_s0 + $0xa8] sm:$0xff] }
   0x9   :  { %v1385_v25 = vld [vmem:[%s2088_s0 + $0xd0] sm:$0xff]  ;;  %v36_v26 = vld [vmem:[%s2088_s0 + $0xc8] sm:$0xff]  ;;  %v35_v27 = vld [vmem:[%s2088_s0 + $0xc0] sm:$0xff] }
   0xa   :  { %73 = vperm.xlu2 %1116, %v1292_v4   ;;  %v1397_v28 = vld [vmem:[%s2088_s0 + $0xe8] sm:$0xff]  ;;  %v39_v29 = vld [vmem:[%s2088_s0 + $0xe0] sm:$0xff]  ;;  %v38_v30 = vld [vmem:[%s2088_s0 + $0xd8] sm:$0xff] }
   0xb   :  { %63 = vperm.xlu1 %1115, %v1297_v5   ;;  %53 = vperm.xlu0 %1114, %v1302_v6   ;;  %v1409_v31 = vld [vmem:[%s2088_s0 + $0xf8] sm:$0xff]  ;;  %v41_v32 = vld [vmem:[%s2088_s0 + $0xf0] sm:$0xff] }
  0x12   :  { %88 = vperm.xlu2 %1116, %v1310_v7  }
  0x13   :  { %83 = vperm.xlu1 %1115, %v1315_v8   ;;  %78 = vperm.xlu0 %1114, %v17_v9  }
  0x1a   :  { %103 = vperm.xlu2 %1116, %v1325_v10  }
  0x1b   :  { %98 = vperm.xlu1 %1115, %v21_v11   ;;  %93 = vperm.xlu0 %1114, %v20_v12  }
  0x22   :  { %118 = vperm.xlu2 %1116, %v1337_v13  }
  0x23   :  { %113 = vperm.xlu1 %1115, %v24_v14   ;;  %108 = vperm.xlu0 %1114, %v23_v15  }
  0x2a   :  { %133 = vperm.xlu2 %1116, %v1349_v16  }
  0x2b   :  { %128 = vperm.xlu1 %1115, %v27_v17   ;;  %123 = vperm.xlu0 %1114, %v26_v18  }
  0x32   :  { %148 = vperm.xlu2 %1116, %v1361_v19  }
  0x33   :  { %143 = vperm.xlu1 %1115, %v30_v20   ;;  %138 = vperm.xlu0 %1114, %v29_v21  }
  0x3a   :  { %163 = vperm.xlu2 %1116, %v1373_v22  }
  0x3b   :  { %158 = vperm.xlu1 %1115, %v33_v23   ;;  %153 = vperm.xlu0 %1114, %v32_v24  }
  0x42   :  { %178 = vperm.xlu2 %1116, %v1385_v25  }
  0x43   :  { %173 = vperm.xlu1 %1115, %v36_v26   ;;  %168 = vperm.xlu0 %1114, %v35_v27  }
  0x4a   :  { %193 = vperm.xlu2 %1116, %v1397_v28  }
  0x4b   :  { %188 = vperm.xlu1 %1115, %v39_v29   ;;  %183 = vperm.xlu0 %1114, %v38_v30  }
  0x52   :  { %1117 = vset.pattern.permute.xlu2 %v1255_v33 }
  0x53   :  { %203 = vperm.xlu1 %1115, %v1409_v31   ;;  %198 = vperm.xlu0 %1114, %v41_v32  }
  0x54   :  { %207 = vperm.xlu2 %1117, %v1284_v3  }
  0x5b   :  { %1119 = vset.pattern.permute.xlu1 %v1255_v33  ;;  %1118 = vset.pattern.permute.xlu0 %v1255_v33 }
  0x5c   :  { %215 = vperm.xlu1 %1119, %v1279_v2   ;;  %219 = vperm.xlu2 %1117, %v1297_v5   ;;  %v1418_v34 = vpop.permute.xlu2 %68 }
  0x5d   :  { %211 = vperm.xlu0 %1118, %v1302_v6  }
  0x64   :  { %223 = vperm.xlu1 %1119, %v1274_v1   ;;  %227 = vperm.xlu2 %1117, %v1292_v4   ;;  %v1423_v35 = vpop.permute.xlu2 %73 }
  0x65   :  { %231 = vperm.xlu0 %1118, %v17_v9  }
  0x6c   :  { %235 = vperm.xlu1 %1119, %v1315_v8   ;;  %239 = vperm.xlu2 %1117, %v1310_v7   ;;  %v1427_v36 = vpop.permute.xlu2 %88  ;;  %v1494_v7 = vld [vmem:[%s2089_s1] ss:$0 sm:$0xff] }
  0x6d   :  { %243 = vperm.xlu0 %1118, %v20_v12   ;;  %v1503_v12 = vld [vmem:[%s2089_s1 + $0x1] ss:$0 sm:$0xff] }
  0x74   :  { %247 = vperm.xlu1 %1119, %v21_v11   ;;  %251 = vperm.xlu2 %1117, %v1325_v10   ;;  %v1430_v37 = vpop.permute.xlu2 %103 }
  0x75   :  { %255 = vperm.xlu0 %1118, %v23_v15   ;;  %v1432_v38 = vpop.permute.xlu1 %58  ;;  %v49_v39 = vpop.permute.xlu0 %48 }
  0x7c   :  { %259 = vperm.xlu1 %1119, %v24_v14   ;;  %263 = vperm.xlu2 %1117, %v1337_v13   ;;  %v1435_v40 = vpop.permute.xlu2 %118 }
  0x7d   :  { %267 = vperm.xlu0 %1118, %v26_v18   ;;  %v64_v41 = vpop.permute.xlu1 %63  ;;  %v1437_v42 = vpop.permute.xlu0 %53  ;;  %v1511_v18 = vld [vmem:[%s2089_s1 + $0x2] ss:$0 sm:$0xff] }
  0x84   :  { %271 = vperm.xlu1 %1119, %v27_v17   ;;  %275 = vperm.xlu2 %1117, %v1349_v16   ;;  %v1440_v43 = vpop.permute.xlu2 %133 }
  0x85   :  { %279 = vperm.xlu0 %1118, %v29_v21   ;;  %v1442_v44 = vpop.permute.xlu1 %83  ;;  %v1444_v45 = vpop.permute.xlu0 %78 }
  0x8c   :  { %283 = vperm.xlu1 %1119, %v30_v20   ;;  %287 = vperm.xlu2 %1117, %v1361_v19   ;;  %v1447_v46 = vpop.permute.xlu2 %148 }
  0x8d   :  { %291 = vperm.xlu0 %1118, %v32_v24   ;;  %v1449_v47 = vpop.permute.xlu1 %98  ;;  %v1451_v48 = vpop.permute.xlu0 %93 }
  0x94   :  { %295 = vperm.xlu1 %1119, %v33_v23   ;;  %299 = vperm.xlu2 %1117, %v1373_v22   ;;  %v1454_v49 = vpop.permute.xlu2 %163 }
  0x95   :  { %303 = vperm.xlu0 %1118, %v35_v27   ;;  %v1456_v50 = vpop.permute.xlu1 %113  ;;  %v1458_v51 = vpop.permute.xlu0 %108 }
  0x9c   :  { %307 = vperm.xlu1 %1119, %v36_v26   ;;  %311 = vperm.xlu2 %1117, %v1385_v25   ;;  %v1461_v52 = vpop.permute.xlu2 %178 }
  0x9d   :  { %315 = vperm.xlu0 %1118, %v38_v30   ;;  %v1463_v53 = vpop.permute.xlu1 %128  ;;  %v1465_v54 = vpop.permute.xlu0 %123 }
  0xa4   :  { %319 = vperm.xlu1 %1119, %v39_v29   ;;  %323 = vperm.xlu2 %1117, %v1397_v28   ;;  %v1468_v55 = vpop.permute.xlu2 %193 }
  0xa5   :  { %327 = vperm.xlu0 %1118, %v41_v32   ;;  %v1470_v57 = vpop.permute.xlu1 %143  ;;  %v1472_v58 = vpop.permute.xlu0 %138 }
  0xac   :  { %331 = vperm.xlu1 %1119, %v1409_v31  }
  0xad   :  { %v1478_v60 = vpop.permute.xlu1 %158  ;;  %v1480_v61 = vpop.permute.xlu0 %153 }
  0xae   :  { %v208_v62 = vpop.permute.xlu2 %207 }
  0xaf   :  { %v334_v63 = vsel %vm45_vm0, %v49_v39, %v208_v62 }
  0xb0   :  { %v1484_v0 = vmul.f32 0.1, %v334_v63  ;;  %v718_v1 = vsub.f32 0.0, %v334_v63 }
  0xb2   :  { %v750_v2 = vmul.f32 1.442695, %v718_v1  ;;  %v462_v3 = vmul.f32 -6.0, %v1484_v0  ;;  %v398_v19 = vmul.f32 %v1484_v0, %v1484_v0  ;;  %vm654_vm1 = vcmp.lt.f32.partialorder %v1484_v0, 1.0 }
  0xb4   :  { %1123 = vpow2.f32 %v750_v2  ;;  %v494_v8 = vadd.f32 15.0, %v462_v3  ;;  %v430_v30 = vmul.f32 %v398_v19, %v1484_v0 }
  0xb5   :  { %v1487_v4 = vpop.permute.xlu1 %173  ;;  %v1489_v5 = vpop.permute.xlu0 %168 }
  0xb6   :  { %v220_v6 = vpop.permute.xlu2 %219  ;;  %v526_v15 = vmul.f32 %v494_v8, %v1484_v0 }
  0xb7   :  { %v337_v9 = vsel %vm45_vm0, %v64_v41, %v220_v6 }
  0xb8   :  { %v1498_v10 = vmul.f32 0.1, %v337_v9  ;;  %v721_v11 = vsub.f32 0.0, %v337_v9  ;;  %v1080_v25 = vadd.f32 -10.0, %v526_v15 }
  0xba   :  { %v1124_v13 = vpop.eup %1123  ;;  %v465_v14 = vmul.f32 -6.0, %v1498_v10  ;;  %v756_v17 = vmul.f32 1.442695, %v721_v11  ;;  %v590_v39 = vmul.f32 %v1080_v25, %v430_v30  ;;  %v401_v63 = vmul.f32 %v1498_v10, %v1498_v10 }
  0xbb   :  { %v818_v16 = vmul.f32 %v1124_v13, %v1494_v7  ;;  %vm657_vm2 = vcmp.lt.f32.partialorder %v1498_v10, 1.0 }
  0xbc   :  { %1125 = vpow2.f32 %v756_v17  ;;  %v497_v23 = vadd.f32 15.0, %v465_v14  ;;  %v622_v8 = vadd.f32 1.0, %v590_v39  ;;  %v433_v14 = vmul.f32 %v401_v63, %v1498_v10 }
  0xbd   :  { %v851_v20 = vadd.f32 %v1503_v12, %v818_v16  ;;  %v1516_v21 = vpop.permute.xlu1 %188  ;;  %v1518_v22 = vpop.permute.xlu0 %183 }
  0xbe   :  { %v228_v24 = vpop.permute.xlu2 %227  ;;  %v529_v32 = vmul.f32 %v497_v23, %v1498_v10  ;;  %v686_v25 = vsel %vm654_vm1, %v622_v8, 0.0 }
  0xbf   :  { %v883_v26 = vmul.f32 %v1124_v13, %v851_v20  ;;  %v339_v27 = vsel %vm45_vm0, %v1423_v35, %v228_v24 }
  0xc0   :  { %v1523_v28 = vmul.f32 0.1, %v339_v27  ;;  %v723_v29 = vsub.f32 0.0, %v339_v27  ;;  %v1083_v2 = vadd.f32 -10.0, %v529_v32 }
  0xc1   :  { %v916_v31 = vadd.f32 %v1511_v18, %v883_v26 }
  0xc2   :  { %v1126_v33 = vpop.eup %1125  ;;  %v467_v56 = vmul.f32 -6.0, %v1523_v28  ;;  %v760_v62 = vmul.f32 1.442695, %v723_v29  ;;  %v593_v19 = vmul.f32 %v1083_v2, %v433_v14  ;;  %vm659_vm3 = vcmp.lt.f32.partialorder %v1523_v28, 1.0 }
  0xc3   :  { %v948_v41 = vmul.f32 1.442695, %v916_v31  ;;  %v821_v35 = vmul.f32 %v1126_v33, %v1494_v7  ;;  %v403_v31 = vmul.f32 %v1523_v28, %v1523_v28 }
  0xc4   :  { %v499_v9 = vadd.f32 15.0, %v467_v56  ;;  %v625_v0 = vadd.f32 1.0, %v593_v19 }
  0xc5   :  { %1127 = vpow2.f32 %v948_v41  ;;  %v1532_v1 = vpop.permute.xlu1 %203  ;;  %v854_v3 = vadd.f32 %v1503_v12, %v821_v35  ;;  %v1535_v11 = vpop.permute.xlu0 %198  ;;  %v435_v8 = vmul.f32 %v403_v31, %v1523_v28 }
  0xc6   :  { %1129 = vpow2.f32 %v760_v62  ;;  %v240_v6 = vpop.permute.xlu2 %239  ;;  %v531_v26 = vmul.f32 %v499_v9, %v1523_v28  ;;  %v689_v14 = vsel %vm657_vm2, %v625_v0, 0.0 }
  0xc7   :  { %v342_v13 = vsel %vm45_vm0, %v1427_v36, %v240_v6  ;;  %v886_v15 = vmul.f32 %v1126_v33, %v854_v3 }
  0xc8   :  { %v1541_v16 = vmul.f32 0.1, %v342_v13  ;;  %v726_v17 = vsub.f32 0.0, %v342_v13  ;;  %v1085_v56 = vadd.f32 -10.0, %v531_v26 }
  0xc9   :  { %v919_v20 = vadd.f32 %v1511_v18, %v886_v15 }
  0xca   :  { %v470_v23 = vmul.f32 -6.0, %v1541_v16  ;;  %v766_v27 = vmul.f32 1.442695, %v726_v17  ;;  %v406_v15 = vmul.f32 %v1541_v16, %v1541_v16  ;;  %vm662_vm4 = vcmp.lt.f32.partialorder %v1541_v16, 1.0 }
  0xcb   :  { %v1128_v24 = vpop.eup %1127  ;;  %v954_v30 = vmul.f32 1.442695, %v919_v20  ;;  %v595_v20 = vmul.f32 %v1085_v56, %v435_v8 }
  0xcc   :  { %v1130_v29 = vpop.eup %1129  ;;  %v1012_v36 = vmul.f32 %v1128_v24, %v686_v25  ;;  %v502_v33 = vadd.f32 15.0, %v470_v23  ;;  %1131 = vpow2.f32 %v766_v27  ;;  %v438_v31 = vmul.f32 %v406_v15, %v1541_v16 }
  0xcd   :  { %v823_v32 = vmul.f32 %v1130_v29, %v1494_v7  ;;  %1133 = vpow2.f32 %v954_v30 }
  0xce   :  { %1044 = vst [vmem:[%s2090_s2] sm:$0xff] %v1012_v36  ;;  %v216_v39 = vpop.permute.xlu1 %215  ;;  %v252_v41 = vpop.permute.xlu2 %251  ;;  %v534_v35 = vmul.f32 %v502_v33, %v1541_v16 }
  0xcf   :  { %v856_v62 = vadd.f32 %v1503_v12, %v823_v32  ;;  %v336_v63 = vsel %vm45_vm0, %v1432_v38, %v216_v39  ;;  %v345_v6 = vsel %vm45_vm0, %v1430_v37, %v252_v41  ;;  %v212_v13 = vpop.permute.xlu0 %211  ;;  %v627_v41 = vadd.f32 1.0, %v595_v20 }
  0xd0   :  { %v1558_v2 = vmul.f32 0.1, %v336_v63  ;;  %v720_v3 = vsub.f32 0.0, %v336_v63  ;;  %v1569_v24 = vmul.f32 0.1, %v345_v6  ;;  %v729_v37 = vsub.f32 0.0, %v345_v6 }
  0xd1   :  { %v888_v9 = vmul.f32 %v1130_v29, %v856_v62  ;;  %v1088_v10 = vadd.f32 -10.0, %v534_v35  ;;  %v335_v27 = vsel %vm45_vm0, %v1437_v42, %v212_v13 }
  0xd2   :  { %v464_v38 = vmul.f32 -6.0, %v1558_v2  ;;  %v754_v17 = vmul.f32 1.442695, %v720_v3  ;;  %v1132_v19 = vpop.eup %1131  ;;  %v473_v33 = vmul.f32 -6.0, %v1569_v24  ;;  %v772_v0 = vmul.f32 1.442695, %v729_v37 }
  0xd3   :  { %v921_v23 = vadd.f32 %v1511_v18, %v888_v9  ;;  %v1134_v25 = vpop.eup %1133  ;;  %v826_v26 = vmul.f32 %v1132_v19, %v1494_v7  ;;  %v1581_v39 = vmul.f32 0.1, %v335_v27  ;;  %v598_v56 = vmul.f32 %v1088_v10, %v438_v31 }
  0xd4   :  { %1135 = vpow2.f32 %v754_v17  ;;  %v1015_v29 = vmul.f32 %v1134_v25, %v689_v14  ;;  %v496_v30 = vadd.f32 15.0, %v464_v38  ;;  %v719_v62 = vsub.f32 0.0, %v335_v27 }
  0xd5   :  { %v958_v36 = vmul.f32 1.442695, %v921_v23  ;;  %v859_v32 = vadd.f32 %v1503_v12, %v826_v26  ;;  %v463_v8 = vmul.f32 -6.0, %v1581_v39  ;;  %v400_v13 = vmul.f32 %v1558_v2, %v1558_v2 }
  0xd6   :  { %1047 = vst [vmem:[%s2090_s2 + $0x18] sm:$0xff] %v1015_v29  ;;  %v224_v63 = vpop.permute.xlu1 %223  ;;  %v528_v35 = vmul.f32 %v496_v30, %v1558_v2  ;;  %v752_v9 = vmul.f32 1.442695, %v719_v62  ;;  %v505_v15 = vadd.f32 15.0, %v473_v33  ;;  %v691_v17 = vsel %vm659_vm3, %v627_v41, 0.0  ;;  %v264_v31 = vpop.permute.xlu2 %263 }
  0xd7   :  { %1137 = vpow2.f32 %v958_v36  ;;  %v891_v42 = vmul.f32 %v1132_v19, %v859_v32  ;;  %v338_v38 = vsel %vm45_vm0, %v1418_v34, %v224_v63  ;;  %v630_v19 = vadd.f32 1.0, %v598_v56  ;;  %v232_v56 = vpop.permute.xlu0 %231 }
  0xd8   :  { %1139 = vpow2.f32 %v772_v0  ;;  %v1082_v23 = vadd.f32 -10.0, %v528_v35  ;;  %v1594_v25 = vmul.f32 0.1, %v338_v38  ;;  %v722_v10 = vsub.f32 0.0, %v338_v38 }
  0xd9   :  { %v924_v6 = vadd.f32 %v1511_v18, %v891_v42  ;;  %1141 = vpow2.f32 %v752_v9  ;;  %v495_v27 = vadd.f32 15.0, %v463_v8  ;;  %v432_v36 = vmul.f32 %v400_v13, %v1558_v2 }
  0xda   :  { %v1136_v3 = vpop.eup %1135  ;;  %v537_v30 = vmul.f32 %v505_v15, %v1569_v24  ;;  %v409_v32 = vmul.f32 %v1569_v24, %v1569_v24  ;;  %v466_v0 = vmul.f32 -6.0, %v1594_v25  ;;  %v758_v41 = vmul.f32 1.442695, %v722_v10 }
  0xdb   :  { %v820_v14 = vmul.f32 %v1136_v3, %v1494_v7  ;;  %v964_v20 = vmul.f32 1.442695, %v924_v6  ;;  %v694_v16 = vsel %vm662_vm4, %v630_v19, 0.0  ;;  %v592_v42 = vmul.f32 %v1082_v23, %v432_v36 }
  0xdc   :  { %v399_v63 = vmul.f32 %v1581_v39, %v1581_v39  ;;  %vm656_vm5 = vcmp.lt.f32.partialorder %v1558_v2, 1.0  ;;  %v527_v6 = vmul.f32 %v495_v27, %v1581_v39  ;;  %v348_v8 = vsel %vm45_vm0, %v1435_v40, %v264_v31 }
  0xdd   :  { %v1138_v28 = vpop.eup %1137  ;;  %v853_v37 = vadd.f32 %v1503_v12, %v820_v14  ;;  %1143 = vpow2.f32 %v964_v20  ;;  %v1091_v13 = vadd.f32 -10.0, %v537_v30  ;;  %v340_v15 = vsel %vm45_vm0, %v1444_v45, %v232_v56 }
  0xde   :  { %v1017_v26 = vmul.f32 %v1138_v28, %v691_v17  ;;  %v1140_v29 = vpop.eup %1139  ;;  %1145 = vpow2.f32 %v758_v41  ;;  %v498_v19 = vadd.f32 15.0, %v466_v0  ;;  %v1619_v20 = vmul.f32 0.1, %v348_v8 }
  0xdf   :  { %v885_v34 = vmul.f32 %v1136_v3, %v853_v37  ;;  %v829_v33 = vmul.f32 %v1140_v29, %v1494_v7  ;;  %v1142_v35 = vpop.eup %1141  ;;  %v732_v28 = vsub.f32 0.0, %v348_v8  ;;  %v441_v37 = vmul.f32 %v409_v32, %v1569_v24 }
  0xe0   :  { %1049 = vst [vmem:[%s2090_s2 + $0x28] sm:$0xff] %v1017_v26  ;;  %v819_v14 = vmul.f32 %v1142_v35, %v1494_v7  ;;  %v1081_v26 = vadd.f32 -10.0, %v527_v6  ;;  %v476_v27 = vmul.f32 -6.0, %v1619_v20  ;;  %v1625_v36 = vmul.f32 0.1, %v340_v15 }
  0xe1   :  { %v918_v62 = vadd.f32 %v1511_v18, %v885_v34  ;;  %v862_v3 = vadd.f32 %v1503_v12, %v829_v33  ;;  %v624_v45 = vadd.f32 1.0, %v592_v42  ;;  %vm665_vm6 = vcmp.lt.f32.partialorder %v1569_v24, 1.0 }
  0xe2   :  { %v852_v40 = vadd.f32 %v1503_v12, %v819_v14  ;;  %v778_v34 = vmul.f32 1.442695, %v732_v28  ;;  %v601_v31 = vmul.f32 %v1091_v13, %v441_v37  ;;  %v431_v33 = vmul.f32 %v399_v63, %v1581_v39 }
  0xe3   :  { %v952_v9 = vmul.f32 1.442695, %v918_v62  ;;  %v1144_v38 = vpop.eup %1143  ;;  %v894_v17 = vmul.f32 %v1140_v29, %v862_v3  ;;  %v530_v0 = vmul.f32 %v498_v19, %v1594_v25  ;;  %v402_v56 = vmul.f32 %v1594_v25, %v1594_v25  ;;  %v236_v3 = vpop.permute.xlu1 %235 }
  0xe4   :  { %v1020_v23 = vmul.f32 %v1144_v38, %v694_v16  ;;  %v884_v29 = vmul.f32 %v1142_v35, %v852_v40  ;;  %v1146_v30 = vpop.eup %1145  ;;  %v591_v42 = vmul.f32 %v1081_v26, %v431_v33  ;;  %v508_v62 = vadd.f32 15.0, %v476_v27  ;;  %v276_v40 = vpop.permute.xlu2 %275 }
  0xe5   :  { %1147 = vpow2.f32 %v952_v9  ;;  %v927_v10 = vadd.f32 %v1511_v18, %v894_v17  ;;  %v822_v16 = vmul.f32 %v1146_v30, %v1494_v7  ;;  %v468_v35 = vmul.f32 -6.0, %v1625_v36 }
  0xe6   :  { %1052 = vst [vmem:[%s2090_s2 + $0x40] sm:$0xff] %v1020_v23  ;;  %v917_v41 = vadd.f32 %v1511_v18, %v884_v29  ;;  %1149 = vpow2.f32 %v778_v34  ;;  %v688_v63 = vsel %vm656_vm5, %v624_v45, 0.0  ;;  %v724_v13 = vsub.f32 0.0, %v340_v15 }
  0xe7   :  { %v970_v32 = vmul.f32 1.442695, %v927_v10  ;;  %v855_v9 = vadd.f32 %v1503_v12, %v822_v16  ;;  %v633_v38 = vadd.f32 1.0, %v601_v31  ;;  %v1084_v17 = vadd.f32 -10.0, %v530_v0 }
  0xe8   :  { %v950_v8 = vmul.f32 1.442695, %v917_v41  ;;  %v500_v19 = vadd.f32 15.0, %v468_v35  ;;  %v762_v23 = vmul.f32 1.442695, %v724_v13  ;;  %v341_v37 = vsel %vm45_vm0, %v1442_v44, %v236_v3  ;;  %v244_v35 = vpop.permute.xlu0 %243 }
  0xe9   :  { %1151 = vpow2.f32 %v970_v32  ;;  %v887_v28 = vmul.f32 %v1146_v30, %v855_v9  ;;  %v623_v2 = vadd.f32 1.0, %v591_v42  ;;  %vm655_vm7 = vcmp.lt.f32.partialorder %v1581_v39, 1.0 }
  0xea   :  { %1153 = vpow2.f32 %v950_v8  ;;  %v434_v15 = vmul.f32 %v402_v56, %v1594_v25  ;;  %v540_v10 = vmul.f32 %v508_v62, %v1619_v20  ;;  %v1651_v45 = vmul.f32 0.1, %v341_v37 }
  0xeb   :  { %v1148_v6 = vpop.eup %1147  ;;  %v920_v27 = vadd.f32 %v1511_v18, %v887_v28  ;;  %1155 = vpow2.f32 %v762_v23  ;;  %v725_v29 = vsub.f32 0.0, %v341_v37  ;;  %v697_v34 = vsel %vm665_vm6, %v633_v38, 0.0 }
  0xec   :  { %v1014_v14 = vmul.f32 %v1148_v6, %v688_v63  ;;  %v1150_v26 = vpop.eup %1149  ;;  %v412_v30 = vmul.f32 %v1619_v20, %v1619_v20  ;;  %v351_v32 = vsel %vm45_vm0, %v1440_v43, %v276_v40  ;;  %v594_v0 = vmul.f32 %v1084_v17, %v434_v15 }
  0xed   :  { %v832_v31 = vmul.f32 %v1150_v26, %v1494_v7  ;;  %v956_v41 = vmul.f32 1.442695, %v920_v27  ;;  %v532_v56 = vmul.f32 %v500_v19, %v1625_v36  ;;  %v687_v16 = vsel %vm655_vm7, %v623_v2, 0.0 }
  0xee   :  { %1046 = vst [vmem:[%s2090_s2 + $0x10] sm:$0xff] %v1014_v14  ;;  %v1094_v42 = vadd.f32 -10.0, %v540_v10  ;;  %v404_v62 = vmul.f32 %v1625_v36, %v1625_v36  ;;  %v469_v43 = vmul.f32 -6.0, %v1651_v45  ;;  %v764_v6 = vmul.f32 1.442695, %v725_v29 }
  0xef   :  { %v1152_v44 = vpop.eup %1151  ;;  %v865_v24 = vadd.f32 %v1503_v12, %v832_v31  ;;  %1157 = vpow2.f32 %v956_v41  ;;  %v1671_v63 = vmul.f32 0.1, %v351_v32  ;;  %v444_v8 = vmul.f32 %v412_v30, %v1619_v20 }
  0xf0   :  { %v1023_v33 = vmul.f32 %v1152_v44, %v697_v34  ;;  %v1154_v3 = vpop.eup %1153  ;;  %v735_v13 = vsub.f32 0.0, %v351_v32  ;;  %v626_v38 = vadd.f32 1.0, %v594_v0  ;;  %v1086_v17 = vadd.f32 -10.0, %v532_v56 }
  0xf1   :  { %v1013_v39 = vmul.f32 %v1154_v3, %v687_v16  ;;  %v897_v9 = vmul.f32 %v1150_v26, %v865_v24  ;;  %v1156_v14 = vpop.eup %1155  ;;  %1159 = vpow2.f32 %v764_v6  ;;  %v343_v19 = vsel %vm45_vm0, %v1451_v48, %v244_v35  ;;  %v248_v26 = vpop.permute.xlu1 %247 }
  0xf2   :  { %1055 = vst [vmem:[%s2090_s2 + $0x58] sm:$0xff] %v1023_v33  ;;  %vm658_vm8 = vcmp.lt.f32.partialorder %v1594_v25, 1.0  ;;  %v436_v23 = vmul.f32 %v404_v62, %v1625_v36  ;;  %v824_v37 = vmul.f32 %v1156_v14, %v1494_v7  ;;  %v604_v40 = vmul.f32 %v1094_v42, %v444_v8 }
  0xf3   :  { %1045 = vst [vmem:[%s2090_s2 + $0x8] sm:$0xff] %v1013_v39  ;;  %v930_v28 = vadd.f32 %v1511_v18, %v897_v9  ;;  %v501_v2 = vadd.f32 15.0, %v469_v43  ;;  %v479_v15 = vmul.f32 -6.0, %v1671_v63  ;;  %v784_v10 = vmul.f32 1.442695, %v735_v13 }
  0xf4   :  { %v857_v48 = vadd.f32 %v1503_v12, %v824_v37  ;;  %v1686_v29 = vmul.f32 0.1, %v343_v19  ;;  %v727_v44 = vsub.f32 0.0, %v343_v19  ;;  %v690_v25 = vsel %vm658_vm8, %v626_v38, 0.0 }
  0xf5   :  { %v976_v27 = vmul.f32 1.442695, %v930_v28  ;;  %v1158_v34 = vpop.eup %1157  ;;  %v596_v30 = vmul.f32 %v1086_v17, %v436_v23  ;;  %1161 = vpow2.f32 %v784_v10  ;;  %v344_v33 = vsel %vm45_vm0, %v1449_v47, %v248_v26 }
  0xf6   :  { %v1016_v31 = vmul.f32 %v1158_v34, %v690_v25  ;;  %v889_v32 = vmul.f32 %v1156_v14, %v857_v48  ;;  %v636_v41 = vadd.f32 1.0, %v604_v40  ;;  %vm668_vm9 = vcmp.lt.f32.partialorder %v1619_v20, 1.0  ;;  %v288_v40 = vpop.permute.xlu2 %287 }
  0xf7   :  { %1163 = vpow2.f32 %v976_v27  ;;  %v1160_v0 = vpop.eup %1159  ;;  %v533_v56 = vmul.f32 %v501_v2, %v1651_v45  ;;  %v471_v16 = vmul.f32 -6.0, %v1686_v29  ;;  %v511_v62 = vadd.f32 15.0, %v479_v15 }
  0xf8   :  { %1048 = vst [vmem:[%s2090_s2 + $0x20] sm:$0xff] %v1016_v31  ;;  %v922_v42 = vadd.f32 %v1511_v18, %v889_v32  ;;  %v825_v24 = vmul.f32 %v1160_v0, %v1494_v7  ;;  %v768_v35 = vmul.f32 1.442695, %v727_v44  ;;  %v628_v3 = vadd.f32 1.0, %v596_v30  ;;  %v256_v44 = vpop.permute.xlu0 %255 }
  0xf9   :  { %v405_v47 = vmul.f32 %v1651_v45, %v1651_v45  ;;  %v503_v43 = vadd.f32 15.0, %v471_v16  ;;  %v1701_v6 = vmul.f32 0.1, %v344_v33  ;;  %v728_v9 = vsub.f32 0.0, %v344_v33 }
  0xfa   :  { %v960_v39 = vmul.f32 1.442695, %v922_v42  ;;  %v858_v8 = vadd.f32 %v1503_v12, %v825_v24  ;;  %1165 = vpow2.f32 %v768_v35  ;;  %v700_v14 = vsel %vm668_vm9, %v636_v41, 0.0 }
  0xfb   :  { %v1162_v13 = vpop.eup %1161  ;;  %vm660_vm10 = vcmp.lt.f32.partialorder %v1625_v36, 1.0  ;;  %v1087_v38 = vadd.f32 -10.0, %v533_v56  ;;  %v415_v17 = vmul.f32 %v1671_v63, %v1671_v63  ;;  %v543_v23 = vmul.f32 %v511_v62, %v1671_v63 }
  0xfc   :  { %1167 = vpow2.f32 %v960_v39  ;;  %v890_v28 = vmul.f32 %v1160_v0, %v858_v8  ;;  %v835_v37 = vmul.f32 %v1162_v13, %v1494_v7  ;;  %v692_v15 = vsel %vm660_vm10, %v628_v3, 0.0 }
  0xfd   :  { %v1164_v19 = vpop.eup %1163  ;;  %v437_v10 = vmul.f32 %v405_v47, %v1651_v45  ;;  %v535_v20 = vmul.f32 %v503_v43, %v1686_v29  ;;  %v472_v27 = vmul.f32 -6.0, %v1701_v6  ;;  %v770_v48 = vmul.f32 1.442695, %v728_v9 }
  0xfe   :  { %v1026_v2 = vmul.f32 %v1164_v19, %v700_v14  ;;  %v923_v36 = vadd.f32 %v1511_v18, %v890_v28  ;;  %v868_v26 = vadd.f32 %v1503_v12, %v835_v37  ;;  %vm661_vm11 = vcmp.lt.f32.partialorder %v1651_v45, 1.0 }
  0xff   :  { %v597_v34 = vmul.f32 %v1087_v38, %v437_v10  ;;  %v447_v25 = vmul.f32 %v415_v17, %v1671_v63  ;;  %v407_v30 = vmul.f32 %v1686_v29, %v1686_v29  ;;  %v354_v31 = vsel %vm45_vm0, %v1447_v46, %v288_v40  ;;  %v260_v17 = vpop.permute.xlu1 %259 }
 0x100   :  { %1058 = vst [vmem:[%s2090_s2 + $0x70] sm:$0xff] %v1026_v2  ;;  %v1166_v32 = vpop.eup %1165  ;;  %v962_v33 = vmul.f32 1.442695, %v923_v36  ;;  %v1097_v0 = vadd.f32 -10.0, %v543_v23  ;;  %v900_v41 = vmul.f32 %v1162_v13, %v868_v26  ;;  %1169 = vpow2.f32 %v770_v48 }
 0x101   :  { %v827_v56 = vmul.f32 %v1166_v32, %v1494_v7  ;;  %v1727_v16 = vmul.f32 0.1, %v354_v31  ;;  %v738_v42 = vsub.f32 0.0, %v354_v31  ;;  %v346_v24 = vsel %vm45_vm0, %v1458_v51, %v256_v44 }
 0x102   :  { %v1168_v62 = vpop.eup %1167  ;;  %1171 = vpow2.f32 %v962_v33  ;;  %v933_v35 = vadd.f32 %v1511_v18, %v900_v41  ;;  %v1089_v3 = vadd.f32 -10.0, %v535_v20  ;;  %v504_v46 = vadd.f32 15.0, %v472_v27 }
 0x103   :  { %v1018_v47 = vmul.f32 %v1168_v62, %v692_v15  ;;  %v629_v43 = vadd.f32 1.0, %v597_v34  ;;  %v439_v39 = vmul.f32 %v407_v30, %v1686_v29  ;;  %v860_v8 = vadd.f32 %v1503_v12, %v827_v56 }
 0x104   :  { %v607_v9 = vmul.f32 %v1097_v0, %v447_v25  ;;  %v982_v13 = vmul.f32 1.442695, %v933_v35  ;;  %v482_v14 = vmul.f32 -6.0, %v1727_v16  ;;  %v1736_v38 = vmul.f32 0.1, %v346_v24  ;;  %v300_v0 = vpop.permute.xlu2 %299 }
 0x105   :  { %1050 = vst [vmem:[%s2090_s2 + $0x30] sm:$0xff] %v1018_v47  ;;  %vm671_vm12 = vcmp.lt.f32.partialorder %v1671_v63, 1.0  ;;  %vm663_vm13 = vcmp.lt.f32.partialorder %v1686_v29, 1.0  ;;  %v892_v51 = vmul.f32 %v1166_v32, %v860_v8  ;;  %v790_v19 = vmul.f32 1.442695, %v738_v42 }
 0x106   :  { %v1170_v28 = vpop.eup %1169  ;;  %1173 = vpow2.f32 %v982_v13  ;;  %v599_v23 = vmul.f32 %v1089_v3, %v439_v39  ;;  %v536_v37 = vmul.f32 %v504_v46, %v1701_v6  ;;  %v514_v40 = vadd.f32 15.0, %v482_v14  ;;  %v268_v46 = vpop.permute.xlu0 %267 }
 0x107   :  { %v925_v2 = vadd.f32 %v1511_v18, %v892_v51  ;;  %v828_v15 = vmul.f32 %v1170_v28, %v1494_v7  ;;  %1175 = vpow2.f32 %v790_v19  ;;  %v347_v10 = vsel %vm45_vm0, %v1456_v50, %v260_v17 }
 0x108   :  { %v1172_v20 = vpop.eup %1171  ;;  %v693_v36 = vsel %vm661_vm11, %v629_v43, 0.0  ;;  %v639_v26 = vadd.f32 1.0, %v607_v9  ;;  %v408_v27 = vmul.f32 %v1701_v6, %v1701_v6  ;;  %v474_v48 = vmul.f32 -6.0, %v1736_v38 }
 0x109   :  { %v1019_v44 = vmul.f32 %v1172_v20, %v693_v36  ;;  %v966_v34 = vmul.f32 1.442695, %v925_v2  ;;  %v861_v25 = vadd.f32 %v1503_v12, %v828_v15  ;;  %v730_v30 = vsub.f32 0.0, %v346_v24 }
 0x10a   :  { %v631_v31 = vadd.f32 1.0, %v599_v23  ;;  %v1090_v32 = vadd.f32 -10.0, %v536_v37  ;;  %v546_v33 = vmul.f32 %v514_v40, %v1727_v16  ;;  %v1756_v50 = vmul.f32 0.1, %v347_v10 }
 0x10b   :  { %1051 = vst [vmem:[%s2090_s2 + $0x38] sm:$0xff] %v1019_v44  ;;  %1177 = vpow2.f32 %v966_v34  ;;  %v893_v45 = vmul.f32 %v1170_v28, %v861_v25  ;;  %v774_v41 = vmul.f32 1.442695, %v730_v30  ;;  %v731_v56 = vsub.f32 0.0, %v347_v10 }
 0x10c   :  { %v1174_v42 = vpop.eup %1173  ;;  %v703_v62 = vsel %vm671_vm12, %v639_v26, 0.0  ;;  %v440_v24 = vmul.f32 %v408_v27, %v1701_v6  ;;  %v418_v35 = vmul.f32 %v1727_v16, %v1727_v16  ;;  %v506_v3 = vadd.f32 15.0, %v474_v48 }
 0x10d   :  { %v1176_v47 = vpop.eup %1175  ;;  %v1029_v43 = vmul.f32 %v1174_v42, %v703_v62  ;;  %v926_v39 = vadd.f32 %v1511_v18, %v893_v45  ;;  %1179 = vpow2.f32 %v774_v41  ;;  %v357_v8 = vsel %vm45_vm0, %v1454_v49, %v300_v0 }
 0x10e   :  { %v695_v63 = vsel %vm663_vm13, %v631_v31, 0.0  ;;  %v600_v9 = vmul.f32 %v1090_v32, %v440_v24  ;;  %v838_v13 = vmul.f32 %v1176_v47, %v1494_v7  ;;  %v475_v14 = vmul.f32 -6.0, %v1756_v50 }
 0x10f   :  { %1061 = vst [vmem:[%s2090_s2 + $0x88] sm:$0xff] %v1029_v43  ;;  %v968_v17 = vmul.f32 1.442695, %v926_v39  ;;  %v1100_v51 = vadd.f32 -10.0, %v546_v33  ;;  %v776_v19 = vmul.f32 1.442695, %v731_v56  ;;  %v349_v28 = vsel %vm45_vm0, %v1465_v54, %v268_v46 }
 0x110   :  { %v450_v49 = vmul.f32 %v418_v35, %v1727_v16  ;;  %v871_v29 = vadd.f32 %v1503_v12, %v838_v13  ;;  %v410_v23 = vmul.f32 %v1736_v38, %v1736_v38  ;;  %v1784_v37 = vmul.f32 0.1, %v357_v8 }
 0x111   :  { %v1178_v40 = vpop.eup %1177  ;;  %1181 = vpow2.f32 %v968_v17  ;;  %v538_v2 = vmul.f32 %v506_v3, %v1736_v38  ;;  %v741_v15 = vsub.f32 0.0, %v357_v8  ;;  %v1787_v10 = vmul.f32 0.1, %v349_v28  ;;  %v272_v3 = vpop.permute.xlu1 %271 }
 0x112   :  { %v1021_v20 = vmul.f32 %v1178_v40, %v695_v63  ;;  %v903_v36 = vmul.f32 %v1176_v47, %v871_v29  ;;  %v507_v26 = vadd.f32 15.0, %v475_v14  ;;  %1183 = vpow2.f32 %v776_v19 }
 0x113   :  { %v1180_v54 = vpop.eup %1179  ;;  %v632_v27 = vadd.f32 1.0, %v600_v9  ;;  %v610_v48 = vmul.f32 %v1100_v51, %v450_v49  ;;  %v485_v44 = vmul.f32 -6.0, %v1784_v37  ;;  %vm664_vm14 = vcmp.lt.f32.partialorder %v1701_v6, 1.0 }
 0x114   :  { %1053 = vst [vmem:[%s2090_s2 + $0x48] sm:$0xff] %v1021_v20  ;;  %v936_v34 = vadd.f32 %v1511_v18, %v903_v36  ;;  %v830_v25 = vmul.f32 %v1180_v54, %v1494_v7  ;;  %v796_v30 = vmul.f32 1.442695, %v741_v15  ;;  %v442_v31 = vmul.f32 %v410_v23, %v1736_v38 }
 0x115   :  { %v1092_v32 = vadd.f32 -10.0, %v538_v2  ;;  %v411_v33 = vmul.f32 %v1756_v50, %v1756_v50  ;;  %v477_v0 = vmul.f32 -6.0, %v1787_v10  ;;  %v539_v56 = vmul.f32 %v507_v26, %v1756_v50  ;;  %v312_v26 = vpop.permute.xlu2 %311 }
 0x116   :  { %v988_v45 = vmul.f32 1.442695, %v936_v34  ;;  %v863_v41 = vadd.f32 %v1503_v12, %v830_v25  ;;  %1185 = vpow2.f32 %v796_v30  ;;  %v696_v42 = vsel %vm664_vm14, %v632_v27, 0.0 }
 0x117   :  { %v1182_v6 = vpop.eup %1181  ;;  %v642_v62 = vadd.f32 1.0, %v610_v48  ;;  %v517_v24 = vadd.f32 15.0, %v485_v44  ;;  %v509_v35 = vadd.f32 15.0, %v477_v0  ;;  %v733_v39 = vsub.f32 0.0, %v349_v28 }
 0x118   :  { %v1184_v46 = vpop.eup %1183  ;;  %v1022_v47 = vmul.f32 %v1182_v6, %v696_v42  ;;  %1187 = vpow2.f32 %v988_v45  ;;  %v895_v43 = vmul.f32 %v1180_v54, %v863_v41  ;;  %vm674_vm15 = vcmp.lt.f32.partialorder %v1727_v16, 1.0  ;;  %v280_v6 = vpop.permute.xlu0 %279 }
 0x119   :  { %v602_v8 = vmul.f32 %v1092_v32, %v442_v31  ;;  %v443_v63 = vmul.f32 %v411_v33, %v1756_v50  ;;  %v831_v9 = vmul.f32 %v1184_v46, %v1494_v7  ;;  %v1093_v14 = vadd.f32 -10.0, %v539_v56 }
 0x11a   :  { %1054 = vst [vmem:[%s2090_s2 + $0x50] sm:$0xff] %v1022_v47  ;;  %v928_v13 = vadd.f32 %v1511_v18, %v895_v43  ;;  %v780_v17 = vmul.f32 1.442695, %v733_v39  ;;  %v350_v51 = vsel %vm45_vm0, %v1463_v53, %v272_v3  ;;  %v706_v19 = vsel %vm674_vm15, %v642_v62, 0.0 }
 0x11b   :  { %v864_v16 = vadd.f32 %v1503_v12, %v831_v9  ;;  %v549_v28 = vmul.f32 %v517_v24, %v1784_v37  ;;  %v1814_v49 = vmul.f32 0.1, %v350_v51  ;;  %v541_v40 = vmul.f32 %v509_v35, %v1787_v10 }
 0x11c   :  { %v1186_v29 = vpop.eup %1185  ;;  %v972_v23 = vmul.f32 1.442695, %v928_v13  ;;  %1189 = vpow2.f32 %v780_v17  ;;  %v734_v2 = vsub.f32 0.0, %v350_v51  ;;  %v634_v15 = vadd.f32 1.0, %v602_v8 }
 0x11d   :  { %v896_v20 = vmul.f32 %v1184_v46, %v864_v16  ;;  %v421_v36 = vmul.f32 %v1784_v37, %v1784_v37  ;;  %v841_v53 = vmul.f32 %v1186_v29, %v1494_v7  ;;  %v603_v27 = vmul.f32 %v1093_v14, %v443_v63 }
 0x11e   :  { %v1188_v54 = vpop.eup %1187  ;;  %1191 = vpow2.f32 %v972_v23  ;;  %v413_v48 = vmul.f32 %v1787_v10, %v1787_v10  ;;  %v478_v44 = vmul.f32 -6.0, %v1814_v49  ;;  %vm666_vm1 = vcmp.lt.f32.partialorder %v1736_v38, 1.0 }
 0x11f   :  { %v1032_v34 = vmul.f32 %v1188_v54, %v706_v19  ;;  %v929_v25 = vadd.f32 %v1511_v18, %v896_v20  ;;  %v874_v30 = vadd.f32 %v1503_v12, %v841_v53  ;;  %v1103_v31 = vadd.f32 -10.0, %v549_v28 }
 0x120   :  { %v1095_v32 = vadd.f32 -10.0, %v541_v40  ;;  %v782_v33 = vmul.f32 1.442695, %v734_v2  ;;  %v360_v0 = vsel %vm45_vm0, %v1461_v52, %v312_v26  ;;  %v698_v45 = vsel %vm666_vm1, %v634_v15, 0.0  ;;  %v284_v15 = vpop.permute.xlu1 %283 }
 0x121   :  { %1064 = vst [vmem:[%s2090_s2 + $0xa0] sm:$0xff] %v1032_v34  ;;  %v974_v41 = vmul.f32 1.442695, %v929_v25  ;;  %v453_v56 = vmul.f32 %v421_v36, %v1784_v37  ;;  %v906_v38 = vmul.f32 %v1186_v29, %v874_v30  ;;  %v635_v62 = vadd.f32 1.0, %v603_v27 }
 0x122   :  { %v1190_v42 = vpop.eup %1189  ;;  %v445_v24 = vmul.f32 %v413_v48, %v1787_v10  ;;  %v510_v35 = vadd.f32 15.0, %v478_v44  ;;  %1193 = vpow2.f32 %v782_v33  ;;  %v1836_v46 = vmul.f32 0.1, %v360_v0 }
 0x123   :  { %1195 = vpow2.f32 %v974_v41  ;;  %v939_v3 = vadd.f32 %v1511_v18, %v906_v38  ;;  %v833_v52 = vmul.f32 %v1190_v42, %v1494_v7  ;;  %v613_v43 = vmul.f32 %v1103_v31, %v453_v56 }
 0x124   :  { %v1192_v47 = vpop.eup %1191  ;;  %v605_v39 = vmul.f32 %v1095_v32, %v445_v24  ;;  %v744_v8 = vsub.f32 0.0, %v360_v0  ;;  %v352_v63 = vsel %vm45_vm0, %v1472_v58, %v280_v6  ;;  %v414_v51 = vmul.f32 %v1814_v49, %v1814_v49  ;;  %v324_v32 = vpop.permute.xlu2 %323  ;;  %v1883_v24 = vld [vmem:[%s2089_s1] ss:$0 sm:$0xff] }
 0x125   :  { %v1024_v9 = vmul.f32 %v1192_v47, %v698_v45  ;;  %v994_v13 = vmul.f32 1.442695, %v939_v3  ;;  %v866_v14 = vadd.f32 %v1503_v12, %v833_v52  ;;  %v1842_v17 = vmul.f32 0.1, %v352_v63 }
 0x126   :  { %v542_v19 = vmul.f32 %v510_v35, %v1814_v49  ;;  %v802_v16 = vmul.f32 1.442695, %v744_v8  ;;  %v736_v28 = vsub.f32 0.0, %v352_v63  ;;  %vm667_vm2 = vcmp.lt.f32.partialorder %v1756_v50, 1.0 }
 0x127   :  { %1056 = vst [vmem:[%s2090_s2 + $0x60] sm:$0xff] %v1024_v9  ;;  %1197 = vpow2.f32 %v994_v13  ;;  %v898_v58 = vmul.f32 %v1190_v42, %v866_v14  ;;  %v488_v29 = vmul.f32 -6.0, %v1836_v46  ;;  %v699_v40 = vsel %vm667_vm2, %v635_v62, 0.0  ;;  %v1876_v42 = vld [vmem:[%s2089_s1 + $0x2] ss:$0 sm:$0xff] }
 0x128   :  { %v1194_v23 = vpop.eup %1193  ;;  %vm677_vm3 = vcmp.lt.f32.partialorder %v1784_v37, 1.0  ;;  %1199 = vpow2.f32 %v802_v16  ;;  %v480_v2 = vmul.f32 -6.0, %v1842_v17  ;;  %v645_v36 = vadd.f32 1.0, %v613_v43  ;;  %v1895_v43 = vld [vmem:[%s2089_s1 + $0x1] ss:$0 sm:$0xff] }
 0x129   :  { %v1196_v20 = vpop.eup %1195  ;;  %v637_v53 = vadd.f32 1.0, %v605_v39  ;;  %v931_v26 = vadd.f32 %v1511_v18, %v898_v58  ;;  %v834_v54 = vmul.f32 %v1194_v23, %v1494_v7  ;;  %v446_v27 = vmul.f32 %v414_v51, %v1814_v49 }
 0x12a   :  { %v1025_v50 = vmul.f32 %v1196_v20, %v699_v40  ;;  %v1096_v48 = vadd.f32 -10.0, %v542_v19  ;;  %v786_v44 = vmul.f32 1.442695, %v736_v28  ;;  %v520_v30 = vadd.f32 15.0, %v488_v29  ;;  %v292_v29 = vpop.permute.xlu0 %291 }
 0x12b   :  { %v978_v34 = vmul.f32 1.442695, %v931_v26  ;;  %v867_v25 = vadd.f32 %v1503_v12, %v834_v54  ;;  %v353_v31 = vsel %vm45_vm0, %v1470_v57, %v284_v15  ;;  %v512_v18 = vadd.f32 15.0, %v480_v2 }
 0x12c   :  { %1057 = vst [vmem:[%s2090_s2 + $0x68] sm:$0xff] %v1025_v50  ;;  %1201 = vpow2.f32 %v786_v44  ;;  %v1864_v7 = vmul.f32 0.1, %v353_v31  ;;  %v737_v33 = vsub.f32 0.0, %v353_v31  ;;  %v709_v45 = vsel %vm677_vm3, %v645_v36, 0.0 }
 0x12d   :  { %v1198_v0 = vpop.eup %1197  ;;  %1203 = vpow2.f32 %v978_v34  ;;  %v899_v12 = vmul.f32 %v1194_v23, %v867_v25  ;;  %v606_v38 = vmul.f32 %v1096_v48, %v446_v27  ;;  %v363_v6 = vsel %vm45_vm0, %v1468_v55, %v324_v32  ;;  %v296_v27 = vpop.permute.xlu1 %295 }
 0x12e   :  { %v1200_v41 = vpop.eup %1199  ;;  %v1035_v56 = vmul.f32 %v1198_v0, %v709_v45  ;;  %v481_v57 = vmul.f32 -6.0, %v1864_v7  ;;  %vm669_vm4 = vcmp.lt.f32.partialorder %v1787_v10, 1.0  ;;  %v552_v62 = vmul.f32 %v520_v30, %v1836_v46 }
 0x12f   :  { %v932_v37 = vadd.f32 %v1876_v42, %v899_v12  ;;  %v844_v35 = vmul.f32 %v1883_v24, %v1200_v41  ;;  %v701_v55 = vsel %vm669_vm4, %v637_v53, 0.0  ;;  %v424_v10 = vmul.f32 %v1836_v46, %v1836_v46 }
 0x130   :  { %1067 = vst [vmem:[%s2090_s2 + $0xb8] sm:$0xff] %v1035_v56  ;;  %v544_v3 = vmul.f32 %v512_v18, %v1842_v17  ;;  %v788_v52 = vmul.f32 1.442695, %v737_v33  ;;  %v1898_v8 = vmul.f32 0.1, %v363_v6  ;;  %v747_v63 = vsub.f32 0.0, %v363_v6 }
 0x131   :  { %v980_v47 = vmul.f32 1.442695, %v932_v37  ;;  %v877_v39 = vadd.f32 %v1895_v43, %v844_v35  ;;  %v638_v13 = vadd.f32 1.0, %v606_v38  ;;  %v416_v14 = vmul.f32 %v1842_v17, %v1842_v17 }
 0x132   :  { %v1202_v9 = vpop.eup %1201  ;;  %v513_v51 = vadd.f32 15.0, %v481_v57  ;;  %1205 = vpow2.f32 %v788_v52  ;;  %v1106_v16 = vadd.f32 -10.0, %v552_v62  ;;  %vm670_vm5 = vcmp.lt.f32.partialorder %v1814_v49, 1.0 }
 0x133   :  { %v1204_v19 = vpop.eup %1203  ;;  %1207 = vpow2.f32 %v980_v47  ;;  %v909_v28 = vmul.f32 %v1200_v41, %v877_v39  ;;  %v836_v58 = vmul.f32 %v1883_v24, %v1202_v9  ;;  %v456_v40 = vmul.f32 %v424_v10, %v1836_v46  ;;  %v304_v39 = vpop.permute.xlu0 %303 }
 0x134   :  { %v1027_v23 = vmul.f32 %v1204_v19, %v701_v55  ;;  %v1098_v2 = vadd.f32 -10.0, %v544_v3  ;;  %v491_v36 = vmul.f32 -6.0, %v1898_v8  ;;  %v808_v53 = vmul.f32 1.442695, %v747_v63 }
 0x135   :  { %v942_v15 = vadd.f32 %v1876_v42, %v909_v28  ;;  %v869_v20 = vadd.f32 %v1895_v43, %v836_v58  ;;  %v702_v26 = vsel %vm670_vm5, %v638_v13, 0.0  ;;  %v448_v54 = vmul.f32 %v416_v14, %v1842_v17 }
 0x136   :  { %1059 = vst [vmem:[%s2090_s2 + $0x78] sm:$0xff] %v1027_v23  ;;  %v545_v50 = vmul.f32 %v513_v51, %v1864_v7  ;;  %v355_v49 = vsel %vm45_vm0, %v1480_v61, %v292_v29  ;;  %v616_v48 = vmul.f32 %v1106_v16, %v456_v40  ;;  %1209 = vpow2.f32 %v808_v53  ;;  %v308_v23 = vpop.permute.xlu1 %307 }
 0x137   :  { %v1000_v44 = vmul.f32 1.442695, %v942_v15  ;;  %v901_v34 = vmul.f32 %v1202_v9, %v869_v20  ;;  %v608_v30 = vmul.f32 %v1098_v2, %v448_v54  ;;  %v417_v31 = vmul.f32 %v1864_v7, %v1864_v7 }
 0x138   :  { %v1206_v25 = vpop.eup %1205  ;;  %v1918_v32 = vmul.f32 0.1, %v355_v49  ;;  %v739_v18 = vsub.f32 0.0, %v355_v49  ;;  %v523_v61 = vadd.f32 15.0, %v491_v36  ;;  %vm680_vm6 = vcmp.lt.f32.partialorder %v1836_v46, 1.0 }
 0x139   :  { %v1208_v33 = vpop.eup %1207  ;;  %1211 = vpow2.f32 %v1000_v44  ;;  %v934_v0 = vadd.f32 %v1876_v42, %v901_v34  ;;  %v837_v45 = vmul.f32 %v1883_v24, %v1206_v25  ;;  %v1099_v41 = vadd.f32 -10.0, %v545_v50 }
 0x13a   :  { %v1028_v12 = vmul.f32 %v1208_v33, %v702_v26  ;;  %v648_v56 = vadd.f32 1.0, %v616_v48  ;;  %v356_v6 = vsel %vm45_vm0, %v1478_v60, %v296_v27  ;;  %v640_v37 = vadd.f32 1.0, %v608_v30 }
 0x13b   :  { %v984_v38 = vmul.f32 1.442695, %v934_v0  ;;  %v870_v57 = vadd.f32 %v1895_v43, %v837_v45  ;;  %v449_v62 = vmul.f32 %v417_v31, %v1864_v7  ;;  %v483_v35 = vmul.f32 -6.0, %v1918_v32 }
 0x13c   :  { %1060 = vst [vmem:[%s2090_s2 + $0x80] sm:$0xff] %v1028_v12  ;;  %v792_v55 = vmul.f32 1.442695, %v739_v18  ;;  %v1210_v10 = vpop.eup %1209  ;;  %v427_v52 = vmul.f32 %v1898_v8, %v1898_v8  ;;  %v555_v47 = vmul.f32 %v523_v61, %v1898_v8  ;;  %v1936_v9 = vmul.f32 0.1, %v356_v6  ;;  %v316_v12 = vpop.permute.xlu0 %315 }
 0x13d   :  { %1213 = vpow2.f32 %v984_v38  ;;  %v902_v3 = vmul.f32 %v1206_v25, %v870_v57  ;;  %v609_v60 = vmul.f32 %v1099_v41, %v449_v62  ;;  %v847_v63 = vmul.f32 %v1883_v24, %v1210_v10 }
 0x13e   :  { %1215 = vpow2.f32 %v792_v55  ;;  %v712_v14 = vsel %vm680_vm6, %v648_v56, 0.0  ;;  %vm672_vm7 = vcmp.lt.f32.partialorder %v1842_v17, 1.0  ;;  %v740_v19 = vsub.f32 0.0, %v356_v6 }
 0x13f   :  { %v1212_v13 = vpop.eup %1211  ;;  %v935_v51 = vadd.f32 %v1876_v42, %v902_v3  ;;  %v880_v28 = vadd.f32 %v1895_v43, %v847_v63  ;;  %v515_v58 = vadd.f32 15.0, %v483_v35  ;;  %v358_v29 = vsel %vm45_vm0, %v1489_v5, %v304_v39 }
 0x140   :  { %v1038_v16 = vmul.f32 %v1212_v13, %v712_v14  ;;  %v704_v40 = vsel %vm672_vm7, %v640_v37, 0.0  ;;  %v1109_v15 = vadd.f32 -10.0, %v555_v47  ;;  %v794_v20 = vmul.f32 1.442695, %v740_v19  ;;  %v320_v19 = vpop.permute.xlu1 %319 }
 0x141   :  { %v986_v2 = vmul.f32 1.442695, %v935_v51  ;;  %v641_v46 = vadd.f32 1.0, %v609_v60  ;;  %v459_v17 = vmul.f32 %v427_v52, %v1898_v8  ;;  %v912_v36 = vmul.f32 %v1210_v10, %v880_v28 }
 0x142   :  { %1070 = vst [vmem:[%s2090_s2 + $0xd0] sm:$0xff] %v1038_v16  ;;  %v484_v53 = vmul.f32 -6.0, %v1936_v9  ;;  %v1951_v54 = vmul.f32 0.1, %v358_v29  ;;  %v742_v5 = vsub.f32 0.0, %v358_v29  ;;  %v359_v50 = vsel %vm45_vm0, %v1487_v4, %v308_v23 }
 0x143   :  { %v1214_v26 = vpop.eup %1213  ;;  %1217 = vpow2.f32 %v986_v2  ;;  %v945_v48 = vadd.f32 %v1876_v42, %v912_v36  ;;  %v547_v44 = vmul.f32 %v515_v58, %v1918_v32  ;;  %v619_v34 = vmul.f32 %v1109_v15, %v459_v17 }
 0x144   :  { %v1216_v49 = vpop.eup %1215  ;;  %v1030_v27 = vmul.f32 %v1214_v26, %v704_v40  ;;  %1219 = vpow2.f32 %v794_v20  ;;  %v419_v25 = vmul.f32 %v1918_v32, %v1918_v32  ;;  %vm673_vm8 = vcmp.lt.f32.partialorder %v1864_v7, 1.0 }
 0x145   :  { %v839_v30 = vmul.f32 %v1883_v24, %v1216_v49  ;;  %v1006_v4 = vmul.f32 1.442695, %v945_v48  ;;  %v516_v31 = vadd.f32 15.0, %v484_v53  ;;  %v743_v18 = vsub.f32 0.0, %v359_v50 }
 0x146   :  { %1062 = vst [vmem:[%s2090_s2 + $0x90] sm:$0xff] %v1030_v27  ;;  %v705_v33 = vsel %vm673_vm8, %v641_v46, 0.0  ;;  %v486_v45 = vmul.f32 -6.0, %v1951_v54  ;;  %v798_v61 = vmul.f32 1.442695, %v742_v5  ;;  %v1101_v41 = vadd.f32 -10.0, %v547_v44 }
 0x147   :  { %v872_v0 = vadd.f32 %v1895_v43, %v839_v30  ;;  %1221 = vpow2.f32 %v1006_v4  ;;  %v1967_v56 = vmul.f32 0.1, %v359_v50  ;;  %v800_v38 = vmul.f32 1.442695, %v743_v18 }
 0x148   :  { %v651_v6 = vadd.f32 1.0, %v619_v34  ;;  %v451_v37 = vmul.f32 %v419_v25, %v1918_v32  ;;  %1223 = vpow2.f32 %v798_v61  ;;  %v548_v55 = vmul.f32 %v516_v31, %v1936_v9 }
 0x149   :  { %v1218_v57 = vpop.eup %1217  ;;  %v904_v7 = vmul.f32 %v1216_v49, %v872_v0  ;;  %v487_v10 = vmul.f32 -6.0, %v1967_v56  ;;  %v361_v3 = vsel %vm45_vm0, %v1518_v22, %v316_v12  ;;  %v518_v39 = vadd.f32 15.0, %v486_v45 }
 0x14a   :  { %v1220_v62 = vpop.eup %1219  ;;  %v1031_v35 = vmul.f32 %v1218_v57, %v705_v33  ;;  %1225 = vpow2.f32 %v800_v38  ;;  %vm683_vm9 = vcmp.lt.f32.partialorder %v1898_v8, 1.0  ;;  %v611_v60 = vmul.f32 %v1101_v41, %v451_v37  ;;  %v328_v33 = vpop.permute.xlu0 %327 }
 0x14b   :  { %v937_v52 = vadd.f32 %v1876_v42, %v904_v7  ;;  %v840_v47 = vmul.f32 %v1883_v24, %v1220_v62  ;;  %v420_v63 = vmul.f32 %v1936_v9, %v1936_v9  ;;  %v1984_v22 = vmul.f32 0.1, %v361_v3 }
 0x14c   :  { %1063 = vst [vmem:[%s2090_s2 + $0x98] sm:$0xff] %v1031_v35  ;;  %v745_v51 = vsub.f32 0.0, %v361_v3  ;;  %v715_v28 = vsel %vm683_vm9, %v651_v6, 0.0  ;;  %vm675_vm10 = vcmp.lt.f32.partialorder %v1918_v32, 1.0  ;;  %v1102_v58 = vadd.f32 -10.0, %v548_v55 }
 0x14d   :  { %v990_v13 = vmul.f32 1.442695, %v937_v52  ;;  %v873_v14 = vadd.f32 %v1895_v43, %v840_v47  ;;  %v1222_v16 = vpop.eup %1221  ;;  %v519_v29 = vadd.f32 15.0, %v487_v10  ;;  %v550_v2 = vmul.f32 %v518_v39, %v1951_v54  ;;  %v332_v52 = vpop.permute.xlu1 %331 }
 0x14e   :  { %v1224_v23 = vpop.eup %1223  ;;  %v1041_v40 = vmul.f32 %v1222_v16, %v715_v28  ;;  %v452_v15 = vmul.f32 %v420_v63, %v1936_v9  ;;  %v422_v20 = vmul.f32 %v1951_v54, %v1951_v54  ;;  %v362_v17 = vsel %vm45_vm0, %v1516_v21, %v320_v19 }
 0x14f   :  { %1227 = vpow2.f32 %v990_v13  ;;  %v905_v8 = vmul.f32 %v1220_v62, %v873_v14  ;;  %v842_v46 = vmul.f32 %v1883_v24, %v1224_v23  ;;  %v643_v53 = vadd.f32 1.0, %v611_v60 }
 0x150   :  { %v1226_v36 = vpop.eup %1225  ;;  %1073 = vst [vmem:[%s2090_s2 + $0xe8] sm:$0xff] %v1041_v40  ;;  %v489_v5 = vmul.f32 -6.0, %v1984_v22  ;;  %v804_v50 = vmul.f32 1.442695, %v745_v51  ;;  %v612_v49 = vmul.f32 %v1102_v58, %v452_v15  ;;  %vm676_vm11 = vcmp.lt.f32.partialorder %v1936_v9, 1.0 }
 0x151   :  { %v938_v26 = vadd.f32 %v1876_v42, %v905_v8  ;;  %v875_v27 = vadd.f32 %v1895_v43, %v842_v46  ;;  %v551_v48 = vmul.f32 %v519_v29, %v1967_v56  ;;  %v843_v21 = vmul.f32 %v1883_v24, %v1226_v36 }
 0x152   :  { %v1104_v34 = vadd.f32 -10.0, %v550_v2  ;;  %1229 = vpow2.f32 %v804_v50  ;;  %v746_v25 = vsub.f32 0.0, %v362_v17  ;;  %v423_v4 = vmul.f32 %v1967_v56, %v1967_v56 }
 0x153   :  { %v992_v44 = vmul.f32 1.442695, %v938_v26  ;;  %v907_v30 = vmul.f32 %v1224_v23, %v875_v27  ;;  %v876_v31 = vadd.f32 %v1895_v43, %v843_v21  ;;  %v2007_v18 = vmul.f32 0.1, %v362_v17 }
 0x154   :  { %v707_v45 = vsel %vm675_vm10, %v643_v53, 0.0  ;;  %v454_v61 = vmul.f32 %v422_v20, %v1951_v54  ;;  %v521_v12 = vadd.f32 15.0, %v489_v5  ;;  %v1105_v57 = vadd.f32 -10.0, %v551_v48 }
 0x155   :  { %v1228_v0 = vpop.eup %1227  ;;  %1231 = vpow2.f32 %v992_v44  ;;  %v940_v38 = vadd.f32 %v1876_v42, %v907_v30  ;;  %v908_v6 = vmul.f32 %v1226_v36, %v876_v31  ;;  %v644_v37 = vadd.f32 1.0, %v612_v49 }
 0x156   :  { %v1033_v41 = vmul.f32 %v1228_v0, %v707_v45  ;;  %v614_v7 = vmul.f32 %v1104_v34, %v454_v61  ;;  %v806_v62 = vmul.f32 1.442695, %v746_v25  ;;  %v364_v35 = vsel %vm45_vm0, %v1535_v11, %v328_v33 }
 0x157   :  { %v996_v32 = vmul.f32 1.442695, %v940_v38  ;;  %v455_v55 = vmul.f32 %v423_v4, %v1967_v56  ;;  %v941_v10 = vadd.f32 %v1876_v42, %v908_v6  ;;  %v490_v3 = vmul.f32 -6.0, %v2007_v18 }
 0x158   :  { %1065 = vst [vmem:[%s2090_s2 + $0xa8] sm:$0xff] %v1033_v41  ;;  %v1230_v47 = vpop.eup %1229  ;;  %v553_v39 = vmul.f32 %v521_v12, %v1984_v22  ;;  %1233 = vpow2.f32 %v806_v62  ;;  %v2023_v60 = vmul.f32 0.1, %v364_v35  ;;  %v748_v63 = vsub.f32 0.0, %v364_v35 }
 0x159   :  { %1235 = vpow2.f32 %v996_v32  ;;  %v615_v11 = vmul.f32 %v1105_v57, %v455_v55  ;;  %v998_v13 = vmul.f32 1.442695, %v941_v10  ;;  %v845_v14 = vmul.f32 %v1883_v24, %v1230_v47 }
 0x15a   :  { %v708_v19 = vsel %vm676_vm11, %v644_v37, 0.0  ;;  %v646_v16 = vadd.f32 1.0, %v614_v7  ;;  %v425_v28 = vmul.f32 %v1984_v22, %v1984_v22  ;;  %v365_v58 = vsel %vm45_vm0, %v1532_v1, %v332_v52 }
 0x15b   :  { %v1232_v51 = vpop.eup %1231  ;;  %1237 = vpow2.f32 %v998_v13  ;;  %v878_v23 = vadd.f32 %v1895_v43, %v845_v14  ;;  %v522_v40 = vadd.f32 15.0, %v490_v3  ;;  %vm678_vm12 = vcmp.lt.f32.partialorder %v1951_v54, 1.0 }
 0x15c   :  { %v1034_v29 = vmul.f32 %v1232_v51, %v708_v19  ;;  %v1107_v8 = vadd.f32 -10.0, %v553_v39  ;;  %v492_v2 = vmul.f32 -6.0, %v2023_v60  ;;  %v810_v9 = vmul.f32 1.442695, %v748_v63 }
 0x15d   :  { %v647_v15 = vadd.f32 1.0, %v615_v11  ;;  %v910_v20 = vmul.f32 %v1230_v47, %v878_v23  ;;  %v2039_v46 = vmul.f32 0.1, %v365_v58  ;;  %v749_v59 = vsub.f32 0.0, %v365_v58 }
 0x15e   :  { %1066 = vst [vmem:[%s2090_s2 + $0xb0] sm:$0xff] %v1034_v29  ;;  %v1234_v1 = vpop.eup %1233  ;;  %v710_v17 = vsel %vm678_vm12, %v646_v16, 0.0  ;;  %vm679_vm0 = vcmp.lt.f32.partialorder %v1967_v56, 1.0  ;;  %v457_v36 = vmul.f32 %v425_v28, %v1984_v22  ;;  %1239 = vpow2.f32 %v810_v9 }
 0x15f   :  { %v1236_v54 = vpop.eup %1235  ;;  %v943_v53 = vadd.f32 %v1876_v42, %v910_v20  ;;  %v426_v26 = vmul.f32 %v2007_v18, %v2007_v18  ;;  %v554_v5 = vmul.f32 %v522_v40, %v2007_v18  ;;  %v846_v50 = vmul.f32 %v1883_v24, %v1234_v1 }
 0x160   :  { %v1036_v49 = vmul.f32 %v1236_v54, %v710_v17  ;;  %v617_v27 = vmul.f32 %v1107_v8, %v457_v36  ;;  %v524_v48 = vadd.f32 15.0, %v492_v2  ;;  %v812_v21 = vmul.f32 1.442695, %v749_v59 }
 0x161   :  { %v1238_v44 = vpop.eup %1237  ;;  %v711_v34 = vsel %vm679_vm0, %v647_v15, 0.0  ;;  %v1002_v56 = vmul.f32 1.442695, %v943_v53  ;;  %v879_v25 = vadd.f32 %v1895_v43, %v846_v50  ;;  %v493_v30 = vmul.f32 -6.0, %v2039_v46 }
 0x162   :  { %1068 = vst [vmem:[%s2090_s2 + $0xc0] sm:$0xff] %v1036_v49  ;;  %v1037_v4 = vmul.f32 %v1238_v44, %v711_v34  ;;  %1241 = vpow2.f32 %v812_v21  ;;  %v1108_v31 = vadd.f32 -10.0, %v554_v5  ;;  %v649_v45 = vadd.f32 1.0, %v617_v27 }
 0x163   :  { %1243 = vpow2.f32 %v1002_v56  ;;  %v911_v33 = vmul.f32 %v1234_v1, %v879_v25  ;;  %v556_v61 = vmul.f32 %v524_v48, %v2023_v60  ;;  %v458_v12 = vmul.f32 %v426_v26, %v2007_v18 }
 0x164   :  { %v1240_v0 = vpop.eup %1239  ;;  %1069 = vst [vmem:[%s2090_s2 + $0xc8] sm:$0xff] %v1037_v4  ;;  %v525_v57 = vadd.f32 15.0, %v493_v30  ;;  %v428_v6 = vmul.f32 %v2023_v60, %v2023_v60  ;;  %vm681_vm13 = vcmp.lt.f32.partialorder %v1984_v22, 1.0  ;;  %v429_v13 = vmul.f32 %v2039_v46, %v2039_v46 }
 0x165   :  { %v944_v41 = vadd.f32 %v1876_v42, %v911_v33  ;;  %v848_v38 = vmul.f32 %v1883_v24, %v1240_v0  ;;  %v618_v37 = vmul.f32 %v1108_v31, %v458_v12  ;;  %v713_v32 = vsel %vm681_vm13, %v649_v45, 0.0 }
 0x166   :  { %v1110_v55 = vadd.f32 -10.0, %v556_v61  ;;  %v557_v52 = vmul.f32 %v525_v57, %v2039_v46  ;;  %v460_v63 = vmul.f32 %v428_v6, %v2023_v60  ;;  %vm682_vm14 = vcmp.lt.f32.partialorder %v2007_v18, 1.0 }
 0x167   :  { %v1004_v7 = vmul.f32 1.442695, %v944_v41  ;;  %v881_v62 = vadd.f32 %v1895_v43, %v848_v38  ;;  %v650_v11 = vadd.f32 1.0, %v618_v37  ;;  %v461_v29 = vmul.f32 %v429_v13, %v2039_v46 }
 0x168   :  { %v1242_v35 = vpop.eup %1241  ;;  %v620_v51 = vmul.f32 %v1110_v55, %v460_v63  ;;  %v1111_v16 = vadd.f32 -10.0, %v557_v52  ;;  %vm684_vm15 = vcmp.lt.f32.partialorder %v2023_v60, 1.0  ;;  %vm685_vm1 = vcmp.lt.f32.partialorder %v2039_v46, 1.0 }
 0x169   :  { %v1244_v10 = vpop.eup %1243  ;;  %1245 = vpow2.f32 %v1004_v7  ;;  %v913_v3 = vmul.f32 %v1240_v0, %v881_v62  ;;  %v849_v47 = vmul.f32 %v1883_v24, %v1242_v35  ;;  %v714_v58 = vsel %vm682_vm14, %v650_v11, 0.0 }
 0x16a   :  { %v1039_v39 = vmul.f32 %v1244_v10, %v713_v32  ;;  %v652_v8 = vadd.f32 1.0, %v620_v51 }
 0x16b   :  { %v946_v22 = vadd.f32 %v1876_v42, %v913_v3  ;;  %v882_v14 = vadd.f32 %v1895_v43, %v849_v47  ;;  %v621_v43 = vmul.f32 %v1111_v16, %v461_v29 }
 0x16c   :  { %1071 = vst [vmem:[%s2090_s2 + $0xd8] sm:$0xff] %v1039_v39  ;;  %v716_v18 = vsel %vm684_vm15, %v652_v8, 0.0 }
 0x16d   :  { %v1008_v19 = vmul.f32 1.442695, %v946_v22  ;;  %v914_v28 = vmul.f32 %v1242_v35, %v882_v14  ;;  %v653_v15 = vadd.f32 1.0, %v621_v43 }
 0x16f   :  { %v1246_v24 = vpop.eup %1245  ;;  %1247 = vpow2.f32 %v1008_v19  ;;  %v947_v23 = vadd.f32 %v1876_v42, %v914_v28  ;;  %v717_v59 = vsel %vm685_vm1, %v653_v15, 0.0 }
 0x170   :  { %v1040_v40 = vmul.f32 %v1246_v24, %v714_v58 }
 0x171   :  { %v1010_v2 = vmul.f32 1.442695, %v947_v23 }
 0x172   :  { %1072 = vst [vmem:[%s2090_s2 + $0xe0] sm:$0xff] %v1040_v40 }
 0x173   :  { %1249 = vpow2.f32 %v1010_v2 }
 0x175   :  { %v1248_v9 = vpop.eup %1247 }
 0x176   :  { %v1042_v20 = vmul.f32 %v1248_v9, %v716_v18 }
 0x178   :  { %1074 = vst [vmem:[%s2090_s2 + $0xf0] sm:$0xff] %v1042_v20 }
 0x179   :  { %v1250_v42 = vpop.eup %1249 }
 0x17a   :  { %v1043_v1 = vmul.f32 %v1250_v42, %v717_v59 }
 0x17c   :  { %1075 = vst [vmem:[%s2090_s2 + $0xf8] sm:$0xff] %v1043_v1 }

</bundles_post_ra>
